<compile_context>
chip_gen: v7x
topology: tpu7x:2x2x1
jax: 0.10.0
libtpu: 0.0.40
codegen_flags: <defaults>
</compile_context>

<pallas_src>
import functools

import jax
import jax.numpy as jnp
from jax.experimental import pallas as pl
from jax.experimental.pallas import tpu as pltpu

_LANE = 128


@functools.lru_cache(maxsize=1)
def _vmem_capacity_bytes():
    """Per-core VMEM capacity; conservative 64 MiB fallback (v7x per-TC size)."""
    try:
        cap = int(getattr(pltpu.get_tpu_info(), "vmem_capacity_bytes", 0) or 0)
        if cap > 0:
            return cap
    except Exception:
        pass
    return 64 * 1024 * 1024


def _hard_sigmoid(v):
    return jnp.clip(v * (1.0 / 6.0) + 0.5, 0.0, 1.0)


# ----------------------------- fused single pass -----------------------------
def _ese_fused_kernel(x_ref, w_ref, b_ref, o_ref, *, inv_hw):
    # x_ref: (1, C, HW) activation dtype; w_ref: (C, C) f32; b_ref: (C, 1) f32.
    x = x_ref[0]
    # f32 accumulation without an explicit whole-block astype copy.
    pooled = jnp.sum(x, axis=-1, keepdims=True, dtype=jnp.float32) * inv_hw      # (C, 1)
    se = jnp.dot(w_ref[...], pooled, preferred_element_type=jnp.float32)          # (C, 1)
    gate = _hard_sigmoid(se + b_ref[...])                                         # (C, 1) f32
    # Rescale in the activation dtype (bf16 multiply stays bf16 on v6e/v7x VPUs).
    o_ref[0] = x * gate.astype(x.dtype)


# -------------------------- two-pass (tiled) kernels --------------------------
def _pool_kernel(x_ref, sum_ref, *, hw):
    # x_ref: (1, C, T); sum_ref: (1, C, 1) f32 running sum over spatial tiles.
    t = pl.program_id(1)

    @pl.when(t == 0)
    def _():
        sum_ref[...] = jnp.zeros_like(sum_ref)

    x = x_ref[0]
    tile = x.shape[-1]
    if hw % tile != 0:
        last = pl.num_programs(1) - 1

        @pl.when(t != last)
        def _():
            # Interior tiles: unmasked f32-accumulated reduce.
            sum_ref[0] += jnp.sum(x, axis=-1, keepdims=True, dtype=jnp.float32)

        @pl.when(t == last)
        def _():
            # Tail tile hangs past the end of the array: mask out-of-bounds
            # columns (unspecified data) before accumulating.
            col = jax.lax.broadcasted_iota(jnp.int32, x.shape, 1) + t * tile
            xm = jnp.where(col < hw, x.astype(jnp.float32), 0.0)
            sum_ref[0] += jnp.sum(xm, axis=-1, keepdims=True)
    else:
        sum_ref[0] += jnp.sum(x, axis=-1, keepdims=True, dtype=jnp.float32)


def _rescale_kernel(x_ref, gate_ref, o_ref):
    # x_ref: (1, C, T); gate_ref: (1, C, 1) in x dtype; o_ref: (1, C, T).
    # NOTE: the out-of-bounds tail columns of the last partial tile are computed
    # and "written" here; this is safe only because Pallas masks writeback of
    # edge output blocks.  Keep this invariant if restructuring to manual DMA.
    o_ref[0] = x_ref[0] * gate_ref[0]


def _choose_hw_tile(c, hw, cap):
    """Spatial tile: ~8 MiB f32 buffers on 128 MiB parts, ~4 MiB on 64 MiB parts,
    multiple of 512 lanes when possible, biased toward exact divisors of HW."""
    if hw <= _LANE:
        return hw
    tile_budget = (8 << 20) if cap >= (96 << 20) else (4 << 20)
    t = max(_LANE, tile_budget // (4 * max(c, 1)))
    pref = 512 if t >= 512 else _LANE
    t = max(pref, (t // pref) * pref)
    t = min(t, (hw // _LANE) * _LANE)
    if t > 0 and hw % t != 0:
        # Prefer a nearby exact divisor of HW (avoids tail masking) if it is not
        # much smaller than the budgeted tile.
        for cand in range(t, _LANE - 1, -_LANE):
            if hw % cand == 0:
                if cand * 2 >= t:
                    t = cand
                break
    return max(t, _LANE)


# ---------------------------------- wrapper ----------------------------------
def effective_se(x_nchw, weight, bias, *, force_two_pass=False):
    """EffectiveSE forward.

    x_nchw: (N, C, H, W) float32 or bfloat16
    weight: (C, C)   (squeezed from the Conv2d(C, C, 1, 1) weight)
    bias:   (C,)
    """
    N, C, H, W = x_nchw.shape
    HW = H * W
    x3 = x_nchw.reshape(N, C, HW)                   # pure view: spatial -> lanes
    w = weight.astype(jnp.float32)
    b2 = bias.astype(jnp.float32).reshape(C, 1)     # (C, 1): no in-kernel relayout

    itemsize = x3.dtype.itemsize
    cap = _vmem_capacity_bytes()
    fused_budget = int(cap * 0.75)
    fused_limit = int(cap * 0.90)

    # VMEM for the fused whole-feature-map block: double-buffered in + out, one
    # f32 reduce temp, one product temp, double-buffered f32 weight, plus slop.
    fused_need = 6 * C * HW * itemsize + 4 * C * HW + 8 * C * C + (2 << 20)

    # On small-VMEM parts with 2 TensorCores (v7x-like), a grid=(N,) fused pass
    # leaves a core idle at N==1; prefer the two-pass path whose (N, HW-tiles)
    # parallel grids shard across both cores for large feature maps.
    small_vmem_part = cap <= (80 << 20)
    prefer_two_pass = small_vmem_part and N == 1 and C * HW * itemsize >= (8 << 20)

    use_fused = (not force_two_pass) and (not prefer_two_pass) and fused_need <= fused_budget

    if use_fused:
        out3 = pl.pallas_call(
            functools.partial(_ese_fused_kernel, inv_hw=1.0 / HW),
            out_shape=jax.ShapeDtypeStruct((N, C, HW), x3.dtype),
            grid_spec=pltpu.PrefetchScalarGridSpec(
                num_scalar_prefetch=0,
                grid=(N,),
                in_specs=[
                    pl.BlockSpec((1, C, HW), lambda n: (n, 0, 0)),
                    pl.BlockSpec((C, C), lambda n: (0, 0)),
                    pl.BlockSpec((C, 1), lambda n: (0, 0)),
                ],
                out_specs=pl.BlockSpec((1, C, HW), lambda n: (n, 0, 0)),
            ),
            compiler_params=pltpu.CompilerParams(
                dimension_semantics=("parallel",),
                vmem_limit_bytes=fused_limit,
            ),
            cost_estimate=pl.CostEstimate(
                flops=int(N * (2 * C * C + 2 * C * HW)),
                transcendentals=0,
                bytes_accessed=int(2 * N * C * HW * itemsize + 4 * C * C + 4 * C),
            ),
        )(x3, w, b2)
        return out3.reshape(N, C, H, W)

    # -------- two-pass path: bounded VMEM, (N, HW-tiles) parallel grids --------
    T = _choose_hw_tile(C, HW, cap)
    n_t = pl.cdiv(HW, T)
    tiled_limit = int(min(fused_limit, 8 * C * T * max(itemsize, 4) + (16 << 20)))

    # Pass 1: pooled sums only — the weight never enters the streaming kernel.
    sums = pl.pallas_call(
        functools.partial(_pool_kernel, hw=HW),
        out_shape=jax.ShapeDtypeStruct((N, C, 1), jnp.float32),
        grid_spec=pltpu.PrefetchScalarGridSpec(
            num_scalar_prefetch=0,
            grid=(N, n_t),
            in_specs=[pl.BlockSpec((1, C, T), lambda n, t: (n, 0, t))],
            out_specs=pl.BlockSpec((1, C, 1), lambda n, t: (n, 0, 0)),
        ),
        compiler_params=pltpu.CompilerParams(
            dimension_semantics=("parallel", "arbitrary"),
            vmem_limit_bytes=tiled_limit,
        ),
        cost_estimate=pl.CostEstimate(
            flops=int(N * C * HW),
            transcendentals=0,
            bytes_accessed=int(N * C * HW * itemsize + 4 * N * C),
        ),
    )(x3)

    # Tiny (N,C)x(C,C) gate math hoisted to plain XLA (negligible FLOPs; keeps
    # the f32 weight out of the streaming kernels' VMEM and DMA schedule).
    pooled = sums[:, :, 0] * (1.0 / HW)                                    # (N, C) f32
    se = jnp.einsum("nc,oc->no", pooled, w) + bias.astype(jnp.float32)     # (N, C) f32
    gate = _hard_sigmoid(se).astype(x3.dtype).reshape(N, C, 1)             # activation dtype

    # Pass 2: rescale, fully parallel grid.
    out3 = pl.pallas_call(
        _rescale_kernel,
        out_shape=jax.ShapeDtypeStruct((N, C, HW), x3.dtype),
        grid_spec=pltpu.PrefetchScalarGridSpec(
            num_scalar_prefetch=0,
            grid=(N, n_t),
            in_specs=[
                pl.BlockSpec((1, C, T), lambda n, t: (n, 0, t)),
                pl.BlockSpec((1, C, 1), lambda n, t: (n, 0, 0)),
            ],
            out_specs=pl.BlockSpec((1, C, T), lambda n, t: (n, 0, t)),
        ),
        compiler_params=pltpu.CompilerParams(
            dimension_semantics=("parallel", "parallel"),
            vmem_limit_bytes=tiled_limit,
        ),
        cost_estimate=pl.CostEstimate(
            flops=int(N * C * HW),
            transcendentals=0,
            bytes_accessed=int(2 * N * C * HW * itemsize + N * C * itemsize),
        ),
    )(x3, gate)
    return out3.reshape(N, C, H, W)


# --------------------------------- reference ---------------------------------
def effective_se_ref(x, weight, bias):
    pooled = jnp.mean(x, axis=(2, 3), keepdims=True)                       # (N, C, 1, 1)
    se = jnp.einsum('oc,ncij->noij', weight, pooled) + bias.reshape(1, -1, 1, 1)
    gate = jnp.clip(se / 6.0 + 0.5, 0.0, 1.0)
    return x * gate


if __name__ == "__main__":
    key = jax.random.PRNGKey(0)
    kx, kw, kb, kx2 = jax.random.split(key, 4)

    # --- main small example: exercises the fused single-pass path ---
    N, C, H, W = 2, 4, 16, 16
    x = jax.random.normal(kx, (N, C, H, W), dtype=jnp.float32)
    weight = jax.random.normal(kw, (C, C), dtype=jnp.float32) * 0.1   # Conv2d(C,C,1) weight squeezed
    bias = jax.random.normal(kb, (C,), dtype=jnp.float32) * 0.1

    out = jax.block_until_ready(effective_se(x, weight, bias))
    ref = effective_se_ref(x, weight, bias)
    assert jnp.allclose(out, ref, atol=1e-5, rtol=1e-5), "fused path mismatch vs reference"

    # --- exercise the tiled two-pass path (non-128-multiple spatial size) ---
    N2, C2, H2, W2 = 2, 8, 15, 20            # HW = 300 -> 256-wide tiles with a masked tail
    x2 = jax.random.normal(kx2, (N2, C2, H2, W2), dtype=jnp.float32)
    w2 = jax.random.normal(kw, (C2, C2), dtype=jnp.float32) * 0.1
    b2 = jax.random.normal(kb, (C2,), dtype=jnp.float32) * 0.1
    out2 = jax.block_until_ready(effective_se(x2, w2, b2, force_two_pass=True))
    ref2 = effective_se_ref(x2, w2, b2)
    assert jnp.allclose(out2, ref2, atol=1e-5, rtol=1e-5), "two-pass path mismatch vs reference"

    # --- bf16 activations through the fused path (f32 pooled accumulation) ---
    xb = x.astype(jnp.bfloat16)
    outb = jax.block_until_ready(effective_se(xb, weight, bias))
    refb = effective_se_ref(xb.astype(jnp.float32), weight, bias)
    assert outb.dtype == jnp.bfloat16
    assert jnp.allclose(outb.astype(jnp.float32), refb, atol=3e-2, rtol=3e-2), "bf16 fused mismatch"

    # --- bf16 activations through the two-pass path (bf16 gate rescale) ---
    x2b = x2.astype(jnp.bfloat16)
    out2b = jax.block_until_ready(effective_se(x2b, w2, b2, force_two_pass=True))
    ref2b = effective_se_ref(x2b.astype(jnp.float32), w2, b2)
    assert out2b.dtype == jnp.bfloat16
    assert jnp.allclose(out2b.astype(jnp.float32), ref2b, atol=3e-2, rtol=3e-2), "bf16 two-pass mismatch"

    print("KERNEL_OK")
</pallas_src>

<mosaic_0001>
module attributes {stable_mosaic.version = 11 : i64} {
  func.func @_ese_fused_kernel(%arg0: i32, %arg1: memref<1x4x256xf32, #tpu.memory_space<vmem>>, %arg2: memref<4x4xf32, #tpu.memory_space<vmem>>, %arg3: memref<4x1xf32, #tpu.memory_space<vmem>>, %arg4: memref<1x4x256xf32, #tpu.memory_space<vmem>>) attributes {dimension_semantics = [#tpu.dimension_semantics<parallel>], iteration_bounds = array<i64: 2>, scalar_prefetch = 0 : i64, scratch_operands = 0 : i64, tpu.core_type = #tpu.core_type<tc>, window_params = [{transform_indices = @transform_0, window_bounds = array<i64: 1, 4, 256>}, {pipeline_mode = #tpu.pipeline_mode<synchronous>, transform_indices = @transform_1, window_bounds = array<i64: 4, 4>}, {pipeline_mode = #tpu.pipeline_mode<synchronous>, transform_indices = @transform_2, window_bounds = array<i64: 4, 1>}, {transform_indices = @transform_3, window_bounds = array<i64: 1, 4, 256>}]} {
    %c0 = arith.constant 0 : index
    %c0_0 = arith.constant 0 : index
    %c0_1 = arith.constant 0 : index
    %0 = vector.load %arg1[%c0, %c0_0, %c0_1] : memref<1x4x256xf32, #tpu.memory_space<vmem>>, vector<1x4x256xf32>
    %1 = vector.shape_cast %0 : vector<1x4x256xf32> to vector<4x256xf32>
    %cst = arith.constant dense<0.000000e+00> : vector<4xf32>
    %2 = vector.multi_reduction <add>, %1, %cst [1] : vector<4x256xf32> to vector<4xf32>
    %3 = vector.shape_cast %2 : vector<4xf32> to vector<4x1xf32>
    %cst_2 = arith.constant 3.906250e-03 : f32
    %4 = vector.broadcast %cst_2 : f32 to vector<4x1xf32>
    %5 = arith.mulf %3, %4 : vector<4x1xf32>
    %c0_3 = arith.constant 0 : index
    %c0_4 = arith.constant 0 : index
    %6 = vector.load %arg2[%c0_3, %c0_4] : memref<4x4xf32, #tpu.memory_space<vmem>>, vector<4x4xf32>
    %cst_5 = arith.constant dense<0.000000e+00> : vector<4x1xf32>
    %7 = tpu.matmul %6, %5, %cst_5 {dimension_numbers = #tpu.dot_dimension_numbers<[1], [0], [0], [1], [0, 0, 1, 1], [], []>} : vector<4x4xf32>, vector<4x1xf32>, vector<4x1xf32> -> vector<4x1xf32>
    %c0_6 = arith.constant 0 : index
    %c0_7 = arith.constant 0 : index
    %8 = vector.load %arg3[%c0_6, %c0_7] : memref<4x1xf32, #tpu.memory_space<vmem>>, vector<4x1xf32>
    %9 = arith.addf %7, %8 : vector<4x1xf32>
    %cst_8 = arith.constant 0.166666672 : f32
    %10 = vector.broadcast %cst_8 : f32 to vector<4x1xf32>
    %11 = arith.mulf %9, %10 : vector<4x1xf32>
    %cst_9 = arith.constant 5.000000e-01 : f32
    %12 = vector.broadcast %cst_9 : f32 to vector<4x1xf32>
    %13 = arith.addf %11, %12 : vector<4x1xf32>
    %cst_10 = arith.constant 0.000000e+00 : f32
    %cst_11 = arith.constant 1.000000e+00 : f32
    %14 = vector.broadcast %cst_10 : f32 to vector<4x1xf32>
    %15 = arith.maximumf %14, %13 : vector<4x1xf32>
    %16 = vector.broadcast %cst_11 : f32 to vector<4x1xf32>
    %17 = arith.minimumf %16, %15 : vector<4x1xf32>
    %18 = vector.broadcast %17 : vector<4x1xf32> to vector<4x256xf32>
    %19 = arith.mulf %1, %18 : vector<4x256xf32>
    %c0_12 = arith.constant 0 : index
    %c0_13 = arith.constant 0 : index
    %c0_14 = arith.constant 0 : index
    %20 = vector.load %arg4[%c0_12, %c0_13, %c0_14] : memref<1x4x256xf32, #tpu.memory_space<vmem>>, vector<1x4x256xf32>
    %21 = vector.shape_cast %20 : vector<1x4x256xf32> to vector<4x256xf32>
    %22 = vector.shape_cast %19 : vector<4x256xf32> to vector<1x4x256xf32>
    tpu.vector_store %arg4[%c0_12, %c0_13, %c0_14], %22 {strides = array<i32>} : memref<1x4x256xf32, #tpu.memory_space<vmem>>, vector<1x4x256xf32>,
    return
  }
  func.func @transform_0(%arg0: i32) -> (i32, i32, i32) {
    %c0_i32 = arith.constant 0 : i32
    %c0_i32_0 = arith.constant 0 : i32
    %c0_i32_1 = arith.constant 0 : i32
    return %arg0, %c0_i32, %c0_i32_0 : i32, i32, i32
  }
  func.func @transform_1(%arg0: i32) -> (i32, i32) {
    %c0_i32 = arith.constant 0 : i32
    %c0_i32_0 = arith.constant 0 : i32
    %c0_i32_1 = arith.constant 0 : i32
    return %c0_i32, %c0_i32_0 : i32, i32
  }
  func.func @transform_2(%arg0: i32) -> (i32, i32) {
    %c0_i32 = arith.constant 0 : i32
    %c0_i32_0 = arith.constant 0 : i32
    %c0_i32_1 = arith.constant 0 : i32
    return %c0_i32, %c0_i32_0 : i32, i32
  }
  func.func @transform_3(%arg0: i32) -> (i32, i32, i32) {
    %c0_i32 = arith.constant 0 : i32
    %c0_i32_0 = arith.constant 0 : i32
    %c0_i32_1 = arith.constant 0 : i32
    return %arg0, %c0_i32, %c0_i32_0 : i32, i32, i32
  }
}

</mosaic_0001>

<bundles_post_ra>
// kernel: tpu_custom_call.1
= control target key start
LH: loop header
LB: loop body
LE: loop exit
PB: predicated region body
PF: predicated region fallthrough
CT: control target
= control target key end

     0   :  { %8 = vsyncpa [#allocation3], 0  ;;  %s752_s0 = inlined_call_operand.hbm [shape: f32[2,4,256], index: 0, kind: input, shape index: {}]   ;;  %s753_s1 = inlined_call_operand.vmem [shape: f32[4,4], index: 1, kind: input, shape index: {}]   ;;  %s754_s2 = inlined_call_operand.vmem [shape: f32[4,1], index: 2, kind: input, shape index: {}]   ;;  %s755_s3 = inlined_call_operand.hbm [shape: f32[2,4,256], index: 3, kind: output, shape index: {}]  }
   0x1   :  { %10 = vsyncpa [#allocation3 + $0x1], 0 }
   0x2   :  { %11 = vsyncpa [#allocation4], 0 }
   0x3   :  { %13 = vsyncpa [#allocation4 + $0x1], 0  ;;  %s581_s12 = smov 0   ;;  %s583_s13 = smov 0  }
   0x4   :  { %s585_s14 = smov 0   ;;  %s587_s15 = smov 0  }
   0x5 LB: > { %s602_s16 = sadd.s32 4294967295, %s553_s15   ;;  %s380_s17 = sadd.s32 4294967294, %s553_s15   ;;  %s553_s15 = sphi %s587_s15, %s770_s15   ;;  %s549_s14 = sphi %s585_s14, %s769_s14   ;;  %s545_s13 = sphi %s583_s13, %s768_s13   ;;  %s541_s12 = sphi %s581_s12, %s767_s12  }
   0x6   : > { %s606_s18 = sadd.s32 1, %s553_s15   ;;  %s26_s19 = sadd.s32 1, %s549_s14 }
   0x7   : > { %s23_s20 = ssub.s32 %s553_s15, %s606_s18  ;;  %p33_p0 = scmp.ne.s32.totalorder %s549_s14, %s545_s13 }
   0x8   : > { %p24_p1 = scmp.eq.s32.totalorder %s23_s20, 0  ;;  %p34_p2 = scmp.eq.s32.totalorder %s553_s15, 0 }
   0x9   : > { %p39_p3 = scmp.ne.s32.totalorder %s545_s13, %s541_s12  ;;  %p40_p4 = scmp.eq.s32.totalorder %s602_s16, 0 }
   0xa   : > { %s618_s21 = scalar_select %p24_p1, %s549_s14, %s26_s19  }
   0xb   : > { %p620_p5 = por %p34_p2, %p33_p0  ;;  %p624_p6 = por %p40_p4, %p39_p3 }
   0xc   : > { %p105_p7 = scmp.eq.s32.totalorder %s602_s16, 1  ;;  %p111_p8 = scmp.eq.s32.totalorder %s380_s17, 1 }
   0xd   : > { %p417_p10 = scmp.lt.s32.totalorder %s553_s15, 2  ;;  %s137_s26 = sand.u32 1, %s549_s14  }
   0xe   : > { %p631_p11 = por %p105_p7, %p33_p0  ;;  %p635_p12 = por %p111_p8, %p39_p3 }
   0xf   : > { %s396_s27 = sshll.u32 %s553_s15, 7  ;;  %s383_s28 = sshll.u32 %s137_s26, 3 }
  0x10   : > { %s759_s24 = scalar_select %p631_p11, 1, 0 }
  0x11   : > { %s760_s25 = scalar_select %p635_p12, 1, 0 }
  0x12   : > { %s644_s4 = scalar_lea.hbm %s752_s0, %s396_s27  ;;  %s141_s5 = scalar_lea.vmem [#allocation2], %s383_s28 }
  0x13   : > { %s149_s6 = sshll.u32 %s141_s5, 4  ;;  %p648_p13 = pnand %p417_p10, %p620_p5  ;;  %s652_s6 = int_to_ptr.vmem [resolvable:$true] %s149_s6 }
  0x14   : > { %s138_s8 = scalar_lea.sflag [#allocation3], %s137_s26  ;;  %s457_s9 = scalar_lea.hbm %s644_s4, 128 }
  0x15   : > { %p458_p2 = scmp.ne.s32.totalorder %s644_s4, %s457_s9  ;;  %p459_p3 = pneg %p648_p13 }
  0x16   : > { %s462_s17 = scalar_lea.hbm %s752_s0, 256  ;;  %p463_p5 = scmp.lt.u32.totalorder %s644_s4, %s752_s0 }
  0x17   : > { %p460_p4 = pnand %p459_p3, %p458_p2  ;;  %p464_p8 = scmp.lt.u32.totalorder %s462_s17, %s457_s9 }
  0x18   : > { %p466_p9 = scmp.lt.u32.totalorder %s457_s9, %s644_s4 }
  0x19   : > { %p461_p7 = pneg %p460_p4  ;;  %p465_p10 = por %p464_p8, %p463_p5 }
  0x1b   : > { %p467_p0 = por %p466_p9, %p465_p10 }
  0x1d   : > { %p468_p1 = pnand %p467_p0, %p461_p7 }
  0x1f   : > { %471 = shalt.err (!%p468_p1)
}
  0x20   : > { %s472_s22 = scalar_lea.vmem %s652_s6, 128  ;;  %s555_s26 = smov [#allocation2]  }
  0x21   : > { %p473_p2 = scmp.ne.s32.totalorder %s652_s6, %s472_s22  ;;  %s477_s27 = sshll.u32 %s555_s26, 4  ;;  %s478_s27 = int_to_ptr.vmem [resolvable:$false] %s477_s27 }
  0x22   : > { %s479_s28 = scalar_lea.vmem %s478_s27, 256  ;;  %p480_p11 = scmp.lt.s32.totalorder %s652_s6, %s478_s27 }
  0x23   : > { %p475_p4 = pnand %p473_p2, %p459_p3  ;;  %p481_p5 = scmp.lt.s32.totalorder %s479_s28, %s472_s22 }
  0x25   : > { %p476_p12 = pneg %p475_p4  ;;  %p482_p8 = por %p481_p5, %p480_p11 }
  0x27   : > { %p483_p9 = pnand %p482_p8, %p476_p12 }
  0x29   : > { %486 = shalt.err (!%p483_p9)
}
  0x2a   : > { %412 = dma.hbm_to_vmem [thread:$0]  (!%p648_p13), %s644_s4, 128, %s652_s6, %s138_s8  }
  0x2b   : > { %p762_p0 = scmp.lt.s32.totalorder %s553_s15, 3  ;;  %p763_p1 = scmp.ge.s32.totalorder %s553_s15, 1 }
  0x2d   : > { %p155_p3 = pnand %p763_p1, %p762_p0 }
  0x2e   : > { %s686_s29 = sand.u32 (!%p155_p3), 1, %s545_s13  }
  0x2f   : > { %158 = sbr.rel (%p155_p3) target bundleno = 574 (0x23e), region = 32  ;;  %s387_s30 = sshll.u32 (!%p155_p3), %s686_s29, 3 }
  0x30   : > { %s161_s5 = scalar_lea.sflag (!%p155_p3), [#allocation3], %s686_s29  ;;  %s164_s7 = scalar_lea.vmem (!%p155_p3), [#allocation2], %s387_s30 }
  0x36   : > { %532 = dma.done.wait (%p624_p6), %s161_s5, 128  }
  0x37   : > { %534 = vsyncadd (%p624_p6), %s161_s5, 4294967168  ;;  %vm191_vm0 = vcmask 1043456   ;;  %v187_v0 = vld [vmem:[%s164_s7] sm:$0xff]  ;;  %v556_v5 = vmov 0.0   ;;  %vm557_vm1 = vmmov 0   ;;  %vm200_vm2 = vcmask 31744  }
  0x38   : > { %v189_v1 = vcombine.high %v187_v0, %v187_v0  ;;  %v192_v2 = vsel %vm191_vm0, %v187_v0, 0.0  ;;  %400 = vmatprep.subr.mxu0 %v556_v5  ;;  %402 = vmatprep.mubr.msk.f32.mxu0 %vm557_vm1, %v556_v5  ;;  %v198_v8 = vld [vmem:[%s753_s1] sm:$0xf]  ;;  %v558_v9 = vmov 0   ;;  %v559_v18 = vmov 839922192  }
  0x39   : > { %455 = vset.pattern.permute.xlu0 %v558_v9  ;;  %v199_v10 = vld [vmem:[%s754_s2] sm:$0xf]  ;;  %v286_v19 = vunpack.c.l.s4 %v559_v18  ;;  %v288_v20 = vlaneseq  ;;  %s397_s9 = sshll.u32 %s602_s16, 7  ;;  %s186_s10 = scalar_lea.vmem [#allocation5], %s387_s30 }
  0x3a   : > { %v193_v3 = vsel %vm191_vm0, %v189_v1, 0.0  ;;  %s310_s11 = sshll.u32 %s186_s10, 4  ;;  %s708_s20 = scalar_lea.hbm %s755_s3, %s397_s9  ;;  %s710_s11 = int_to_ptr.vmem [resolvable:$true] %s310_s11 }
  0x3b   : > { %v194_v4 = vadd.f32 %v193_v3, %v192_v2  ;;  %v287_v21 = vunpack.c.0.s8 %v286_v19  ;;  %v289_v22 = vshrl.u32 %v288_v20, 7  ;;  %s296_s22 = scalar_lea.sflag [#allocation4], %s686_s29  ;;  %s487_s26 = scalar_lea.vmem %s710_s11, 128 }
  0x3c   : > { %p488_p6 = scmp.ne.s32.totalorder %s710_s11, %s487_s26  ;;  %p764_p11 = scmp.ne.s32.totalorder %s759_s24, 0 }
  0x3d   : > { %195 = vadd.xlane.f32.xlu0 %v194_v4  ;;  %v290_v23 = vsub.s32 %v287_v21, %v289_v22  ;;  %s560_s16 = smov [#allocation5]  }
  0x3e   : > { %p489_p12 = pnand %p488_p6, %p764_p11  ;;  %s491_s27 = sshll.u32 %s560_s16, 4  ;;  %s492_s27 = int_to_ptr.vmem [resolvable:$false] %s491_s27 }
  0x3f   : > { %s493_s28 = scalar_lea.vmem %s492_s27, 256  ;;  %p494_p7 = scmp.lt.s32.totalorder %s710_s11, %s492_s27 }
  0x40   : > { %p490_p13 = pneg %p489_p12  ;;  %p495_p10 = scmp.lt.s32.totalorder %s493_s28, %s487_s26 }
  0x42   : > { %p496_p2 = por %p495_p10, %p494_p7 }
  0x44   : > { %p497_p4 = pnand %p496_p2, %p490_p13 }
  0xca   : > { %v196_v6 = vpop.xlane.xlu0 %195 }
  0xcb   : > { %v197_v7 = vmul.f32 0.00390625, %v196_v6 }
  0xcd   : > { %401 = vmatpush3.msk.msra.mxu0 %vm191_vm0, %v197_v7 }
  0xce   : > { %403 = vmatmul.mubr.msk.f32.vlgmr.msra.gmra.mrb[0].mxu0 %vm200_vm2, %v198_v8 }
 0x1a1   : > { %v273_v11 = vpop.f32.mrb[0].mxu0 }
 0x1a2   : > { %v274_v12 = vadd.f32 %v273_v11, %v199_v10  ;;  %v404_v13 = vpop.f32.mrb[1].mxu0 }
 0x1a4   : > { %v277_v14 = vmul.f32 0.16666667, %v274_v12 }
 0x1a6   : > { %v278_v15 = vadd.f32 0.5, %v277_v14 }
 0x1a8   : > { %v279_v16 = vmax.f32 %v278_v15, 0.0 }
 0x1aa   : > { %v280_v17 = vmin.f32 %v279_v16, 1.0 }
 0x1ac   : > { %283 = vperm.xlu0 %455, %v280_v17  }
 0x22b   : > { %v284_v24 = vpop.permute.xlu0 %283 }
 0x22c   : > { %v291_v25 = vrot.slane %v284_v24, %v290_v23 }
 0x22e   : > { %v293_v26 = vmul.f32 %v291_v25, %v187_v0 }
 0x230   : > { %294 = vst [vmem:[%s186_s10] sm:$0xff] %v293_v26 }
 0x231   : > { %500 = shalt.err (!%p497_p4)
}
 0x232   : > { %s501_s29 = scalar_lea.hbm %s708_s20, 128  ;;  %s505_s7 = scalar_lea.hbm %s755_s3, 256 }
 0x233   : > { %p502_p5 = scmp.ne.s32.totalorder %s708_s20, %s501_s29  ;;  %p506_p0 = scmp.lt.u32.totalorder %s708_s20, %s755_s3 }
 0x234   : > { %p507_p1 = scmp.lt.u32.totalorder %s505_s7, %s501_s29  ;;  %p509_p6 = scmp.lt.u32.totalorder %s501_s29, %s708_s20 }
 0x235   : > { %p503_p8 = pnand %p502_p5, %p764_p11 }
 0x236   : > { %p508_p3 = por %p507_p1, %p506_p0 }
 0x237   : > { %p504_p9 = pneg %p503_p8 }
 0x238   : > { %p510_p12 = por %p509_p6, %p508_p3 }
 0x23a   : > { %p511_p13 = pnand %p510_p12, %p504_p9 }
 0x23c   : > { %514 = shalt.err (!%p511_p13)
}
 0x23d   : > { %407 = dma.vmem_to_hbm [thread:$0]  (%p764_p11), %s710_s11, 128, %s708_s20, %s296_s22  }
 0x23e PF: > { %s322_s23 = sand.u32 1, %s541_s12   ;;  %p765_p7 = scmp.ne.s32.totalorder %s760_s25, 0 }
 0x23f   : > { %p766_p10 = scmp.ge.s32.totalorder %s553_s15, 2  ;;  %s323_s8 = scalar_lea.sflag [#allocation4], %s322_s23 }
 0x241   : > { %p414_p2 = pnand %p766_p10, %p765_p7 }
 0x243   : > { %536 = dma.done.wait (!%p414_p2), %s323_s8, 128  }
 0x244   : > { %538 = vsyncadd (!%p414_p2), %s323_s8, 4294967168  ;;  %p16_p4 = scmp.ge.s32.totalorder %s606_s18, 4   ;;  %s767_s12 = smov %s545_s13 }
 0x245   : > { %s768_s13 = smov %s549_s14  ;;  %s769_s14 = smov %s618_s21 }
 0x246   : > { %s770_s15 = smov %s606_s18  ;;  %18 = sbr.rel (!%p16_p4) target bundleno = 5 (0x5), region = 77 }
 0x24d   :  { %328 = vsyncpa [#allocation3], 1 }
 0x24e   :  { %330 = vsyncpa [#allocation3 + $0x1], 1 }
 0x24f   :  { %331 = vsyncpa [#allocation4], 1 }
 0x250   :  { %333 = vsyncpa [#allocation4 + $0x1], 1 }

</bundles_post_ra>
